<compile_context>
chip_gen: v7x
topology: tpu7x:2x2x1
jax: 0.10.0
libtpu: 0.0.40
codegen_flags: <defaults>
</compile_context>

<pallas_src>
import functools

import jax
import jax.numpy as jnp
from jax.experimental import pallas as pl
from jax.experimental.pallas import tpu as pltpu


def bilstm_kernel(x_ref, wih_ref, whh_ref, b_ref, hc0_ref, fcw_ref, out_ref,
                  *, T, B, H):
    G = 4 * H  # fused gate width per direction

    # ---- one MXU pass: all timesteps, BOTH directions, all 4 gates; bias folded ----
    gx = (jnp.dot(x_ref[...], wih_ref[...], preferred_element_type=jnp.float32)
          + b_ref[...])                                         # (T*B, 8H)

    # Per-direction recurrent weights, loaded/sliced once (hoisted out of the loop).
    whh_f = whh_ref[:, :G]                                      # (H, 4H)
    whh_b = whh_ref[:, G:]                                      # (H, 4H)

    # Lane constants for the 2-EUP-push nonlinearity:
    #   sigmoid(x) = 0.5*tanh(0.5*x) + 0.5 on i/f/o lanes, plain tanh on g lanes.
    lane = jax.lax.broadcasted_iota(jnp.int32, (1, G), 1)
    is_g = jnp.logical_and(lane >= 2 * H, lane < 3 * H)
    scale = jnp.where(is_g, 1.0, 0.5).astype(jnp.float32)       # pre/post scale
    shift = jnp.where(is_g, 0.0, 0.5).astype(jnp.float32)       # post shift

    def cell(pre, h, c, whh):
        # Recurrent term: single MXU outer-product accumulate per step
        # (no per-lane broadcast chain on the serial path).
        rec = pre + jnp.dot(h, whh, preferred_element_type=jnp.float32)  # (B, 4H)
        gates = jnp.tanh(rec * scale) * scale + shift                    # EUP push 1
        i = gates[:, 0:H]
        f = gates[:, H:2 * H]
        g = gates[:, 2 * H:3 * H]
        o = gates[:, 3 * H:4 * H]
        c_new = f * c + i * g
        h_new = o * jnp.tanh(c_new)                                      # EUP push 2
        return h_new, c_new

    # ---- forward direction: fully unrolled (T static), h/c carried as values ----
    gx_f = gx[:, :G]
    h = hc0_ref[0]
    c = hc0_ref[2]
    for t in range(T):
        h, c = cell(gx_f[t * B:(t + 1) * B, :], h, c, whh_f)

    # ---- reverse direction's contribution to outputs[-1]: exactly one reverse
    #      step over x[T-1] starting from its initial state ----
    h_b, _ = cell(gx[(T - 1) * B:, G:], hc0_ref[1], hc0_ref[3], whh_b)

    # ---- fused fc: [h | h_b | 1] @ [[W_f];[W_b];[b_fc]] in a single MXU pass ----
    ones = jnp.ones((B, 1), jnp.float32)
    h_cat = jnp.concatenate([h, h_b, ones], axis=1)             # (B, 2H+1)
    out_ref[...] = jnp.dot(h_cat, fcw_ref[...],
                           preferred_element_type=jnp.float32)  # (B, C)


def pack_params(params):
    """Pack PyTorch-shaped params into the kernel's fused buffers."""
    C = params["w_ih_f"].shape[1]
    wih = jnp.concatenate([params["w_ih_f"].T, params["w_ih_b"].T], axis=1)   # (C, 8H)
    whh = jnp.concatenate([params["w_hh_f"].T, params["w_hh_b"].T], axis=1)   # (H, 8H)
    b = jnp.concatenate([params["b_ih_f"] + params["b_hh_f"],
                         params["b_ih_b"] + params["b_hh_b"]])[None, :]       # (1, 8H)
    fcw = jnp.concatenate([params["fc_w"].T,                                   # (2H, C)
                           params["fc_b"][None, :]], axis=0)                   # + bias row
    return wih, whh, b, fcw


def bilstm_forward(x_bt, params, h0, c0):
    # x_bt: (B, T, C) one-hot float32 (same layout as the PyTorch module's input).
    B, T, C = x_bt.shape
    H = h0.shape[-1]
    Bp = ((B + 7) // 8) * 8        # pad batch to the 8-row sublane tile

    # X.transpose(0,1) -> (T, Bp, C), flattened so the whole-sequence, both-direction
    # input projection is one 2-D matmul inside the kernel.
    x_p = jnp.zeros((Bp, T, C), jnp.float32).at[:B].set(x_bt)
    x2d = jnp.transpose(x_p, (1, 0, 2)).reshape(T * Bp, C)

    # Stack h0/c0 (both directions) into one buffer: [h_f, h_b, c_f, c_b].
    hc0 = jnp.zeros((4, Bp, H), jnp.float32)
    hc0 = hc0.at[0, :B].set(h0[0]).at[1, :B].set(h0[1])
    hc0 = hc0.at[2, :B].set(c0[0]).at[3, :B].set(c0[1])

    wih, whh, b, fcw = pack_params(params)

    kernel = functools.partial(bilstm_kernel, T=T, B=Bp, H=H)
    out = pl.pallas_call(
        kernel,
        out_shape=jax.ShapeDtypeStruct((Bp, C), jnp.float32),
        in_specs=[pl.BlockSpec(memory_space=pltpu.MemorySpace.VMEM)] * 6,
        out_specs=pl.BlockSpec(memory_space=pltpu.MemorySpace.VMEM),
    )(x2d, wih, whh, b, hc0, fcw)
    return out[:B]


def init_params(key, n_class, n_hidden):
    """Deterministic PyTorch-default-style init, PyTorch-shaped params."""
    H, C = n_hidden, n_class
    ks = jax.random.split(key, 10)
    bound_lstm = H ** -0.5
    bound_fc = (2 * H) ** -0.5

    def u(k, shape, bound):
        return jax.random.uniform(k, shape, jnp.float32, -bound, bound)

    return dict(
        w_ih_f=u(ks[0], (4 * H, C), bound_lstm),   # gates ordered (i, f, g, o)
        w_hh_f=u(ks[1], (4 * H, H), bound_lstm),
        b_ih_f=u(ks[2], (4 * H,), bound_lstm),
        b_hh_f=u(ks[3], (4 * H,), bound_lstm),
        w_ih_b=u(ks[4], (4 * H, C), bound_lstm),
        w_hh_b=u(ks[5], (4 * H, H), bound_lstm),
        b_ih_b=u(ks[6], (4 * H,), bound_lstm),
        b_hh_b=u(ks[7], (4 * H,), bound_lstm),
        fc_w=u(ks[8], (C, 2 * H), bound_fc),        # Linear(2H -> C), (out, in)
        fc_b=u(ks[9], (C,), bound_fc),
    )


def bilstm_reference(x_bt, params, h0, c0):
    """Pure-JAX reference mirroring torch.nn.LSTM(bidirectional) + fc on outputs[-1]."""
    x = jnp.transpose(x_bt, (1, 0, 2))                 # (T, B, C)
    T = x.shape[0]
    H = h0.shape[-1]
    hp = jax.lax.Precision.HIGHEST

    def step(x_t, h, c, w_ih, w_hh, b_ih, b_hh):
        z = (jnp.dot(x_t, w_ih.T, precision=hp)
             + jnp.dot(h, w_hh.T, precision=hp) + b_ih + b_hh)
        i = jax.nn.sigmoid(z[:, 0:H])
        f = jax.nn.sigmoid(z[:, H:2 * H])
        g = jnp.tanh(z[:, 2 * H:3 * H])
        o = jax.nn.sigmoid(z[:, 3 * H:4 * H])
        c_new = f * c + i * g
        return o * jnp.tanh(c_new), c_new

    h, c = h0[0], c0[0]
    for t in range(T):
        h, c = step(x[t], h, c, params["w_ih_f"], params["w_hh_f"],
                    params["b_ih_f"], params["b_hh_f"])
    # reverse direction's hidden at t = T-1 == one reverse step over x[T-1]
    h_b, _ = step(x[T - 1], h0[1], c0[1], params["w_ih_b"], params["w_hh_b"],
                  params["b_ih_b"], params["b_hh_b"])
    hb = jnp.concatenate([h, h_b], axis=1)             # (B, 2H), forward|reverse
    return jnp.dot(hb, params["fc_w"].T, precision=hp) + params["fc_b"][None, :]


if __name__ == "__main__":
    sentence = ("GitHub Actions makes it easy to automate all your software "
                "workflows from continuous integration and delivery to issue "
                "triage and more")
    # sorted() for determinism (the original uses a Python set, whose order varies)
    word2idx = {w: i for i, w in enumerate(sorted(set(sentence.split())))}
    n_class = len(word2idx)   # 19
    n_hidden = 5

    batch, seq_len = 4, 10

    key = jax.random.PRNGKey(0)
    k_param, k_tok, k_h, k_c = jax.random.split(key, 4)

    params = init_params(k_param, n_class, n_hidden)

    tokens = jax.random.randint(k_tok, (batch, seq_len), 0, n_class)
    x = jax.nn.one_hot(tokens, n_class, dtype=jnp.float32)        # (B, T, C)

    # Deterministic stand-in for the torch.randn(1*2, batch, n_hidden) in forward().
    h0 = jax.random.normal(k_h, (2, batch, n_hidden), jnp.float32)
    c0 = jax.random.normal(k_c, (2, batch, n_hidden), jnp.float32)

    out = jax.block_until_ready(bilstm_forward(x, params, h0, c0))
    ref = bilstm_reference(x, params, h0, c0)

    assert out.shape == (batch, n_class), out.shape
    assert jnp.allclose(out, ref, atol=5e-3, rtol=5e-3), \
        f"max abs err = {jnp.max(jnp.abs(out - ref))}"
    print("KERNEL_OK")
</pallas_src>

<mosaic_0001>
module attributes {stable_mosaic.version = 11 : i64} {
  func.func @bilstm_kernel(%arg0: memref<80x19xf32, #tpu.memory_space<vmem>>, %arg1: memref<19x40xf32, #tpu.memory_space<vmem>>, %arg2: memref<5x40xf32, #tpu.memory_space<vmem>>, %arg3: memref<1x40xf32, #tpu.memory_space<vmem>>, %arg4: memref<4x8x5xf32, #tpu.memory_space<vmem>>, %arg5: memref<11x19xf32, #tpu.memory_space<vmem>>, %arg6: memref<8x19xf32, #tpu.memory_space<vmem>>) attributes {dimension_semantics = [], scalar_prefetch = 0 : i64, scratch_operands = 0 : i64, tpu.core_type = #tpu.core_type<tc>} {
    %c0 = arith.constant 0 : index
    %c0_0 = arith.constant 0 : index
    %0 = vector.load %arg0[%c0, %c0_0] : memref<80x19xf32, #tpu.memory_space<vmem>>, vector<80x19xf32>
    %c0_1 = arith.constant 0 : index
    %c0_2 = arith.constant 0 : index
    %1 = vector.load %arg1[%c0_1, %c0_2] : memref<19x40xf32, #tpu.memory_space<vmem>>, vector<19x40xf32>
    %cst = arith.constant dense<0.000000e+00> : vector<80x40xf32>
    %2 = tpu.matmul %0, %1, %cst {dimension_numbers = #tpu.dot_dimension_numbers<[1], [0], [0], [1], [0, 0, 1, 1], [], []>} : vector<80x19xf32>, vector<19x40xf32>, vector<80x40xf32> -> vector<80x40xf32>
    %c0_3 = arith.constant 0 : index
    %c0_4 = arith.constant 0 : index
    %3 = vector.load %arg3[%c0_3, %c0_4] : memref<1x40xf32, #tpu.memory_space<vmem>>, vector<1x40xf32>
    %4 = vector.broadcast %3 : vector<1x40xf32> to vector<80x40xf32>
    %5 = arith.addf %2, %4 : vector<80x40xf32>
    %c0_5 = arith.constant 0 : index
    %c0_6 = arith.constant 0 : index
    %6 = vector.load %arg2[%c0_5, %c0_6] : memref<5x40xf32, #tpu.memory_space<vmem>>, vector<5x20xf32>
    %c0_7 = arith.constant 0 : index
    %c20 = arith.constant 20 : index
    %7 = vector.load %arg2[%c0_7, %c20] : memref<5x40xf32, #tpu.memory_space<vmem>>, vector<5x20xf32>
    %8 = tpu.iota {dimensions = array<i32: 1>} : vector<1x20xi32>
    %c10_i32 = arith.constant 10 : i32
    %9 = vector.broadcast %c10_i32 : i32 to vector<1x20xi32>
    %10 = arith.cmpi sge, %8, %9 : vector<1x20xi32>
    %c15_i32 = arith.constant 15 : i32
    %11 = vector.broadcast %c15_i32 : i32 to vector<1x20xi32>
    %12 = arith.cmpi slt, %8, %11 : vector<1x20xi32>
    %13 = arith.andi %10, %12 : vector<1x20xi1>
    %cst_8 = arith.constant 1.000000e+00 : f32
    %cst_9 = arith.constant 5.000000e-01 : f32
    %14 = vector.broadcast %cst_8 : f32 to vector<1x20xf32>
    %15 = vector.broadcast %cst_9 : f32 to vector<1x20xf32>
    %16 = arith.select %13, %14, %15 : vector<1x20xi1>, vector<1x20xf32>
    %cst_10 = arith.constant 0.000000e+00 : f32
    %cst_11 = arith.constant 5.000000e-01 : f32
    %17 = vector.broadcast %cst_10 : f32 to vector<1x20xf32>
    %18 = vector.broadcast %cst_11 : f32 to vector<1x20xf32>
    %19 = arith.select %13, %17, %18 : vector<1x20xi1>, vector<1x20xf32>
    %20 = vector.extract_strided_slice %5 {offsets = [0, 0], sizes = [80, 20], strides = [1, 1]} : vector<80x40xf32> to vector<80x20xf32>
    %c0_12 = arith.constant 0 : index
    %c0_13 = arith.constant 0 : index
    %c0_14 = arith.constant 0 : index
    %21 = vector.load %arg4[%c0_12, %c0_13, %c0_14] : memref<4x8x5xf32, #tpu.memory_space<vmem>>, vector<1x8x5xf32>
    %22 = vector.shape_cast %21 : vector<1x8x5xf32> to vector<8x5xf32>
    %c2 = arith.constant 2 : index
    %c0_15 = arith.constant 0 : index
    %c0_16 = arith.constant 0 : index
    %23 = vector.load %arg4[%c2, %c0_15, %c0_16] : memref<4x8x5xf32, #tpu.memory_space<vmem>>, vector<1x8x5xf32>
    %24 = vector.shape_cast %23 : vector<1x8x5xf32> to vector<8x5xf32>
    %25 = vector.extract_strided_slice %20 {offsets = [0, 0], sizes = [8, 20], strides = [1, 1]} : vector<80x20xf32> to vector<8x20xf32>
    %cst_17 = arith.constant dense<0.000000e+00> : vector<8x20xf32>
    %26 = tpu.matmul %22, %6, %cst_17 {dimension_numbers = #tpu.dot_dimension_numbers<[1], [0], [0], [1], [0, 0, 1, 1], [], []>} : vector<8x5xf32>, vector<5x20xf32>, vector<8x20xf32> -> vector<8x20xf32>
    %27 = arith.addf %25, %26 : vector<8x20xf32>
    %28 = vector.broadcast %16 : vector<1x20xf32> to vector<8x20xf32>
    %29 = arith.mulf %27, %28 : vector<8x20xf32>
    %30 = math.tanh %29 : vector<8x20xf32>
    %31 = vector.broadcast %16 : vector<1x20xf32> to vector<8x20xf32>
    %32 = arith.mulf %30, %31 : vector<8x20xf32>
    %33 = vector.broadcast %19 : vector<1x20xf32> to vector<8x20xf32>
    %34 = arith.addf %32, %33 : vector<8x20xf32>
    %35 = vector.extract_strided_slice %34 {offsets = [0, 0], sizes = [8, 5], strides = [1, 1]} : vector<8x20xf32> to vector<8x5xf32>
    %36 = vector.extract_strided_slice %34 {offsets = [0, 5], sizes = [8, 5], strides = [1, 1]} : vector<8x20xf32> to vector<8x5xf32>
    %37 = vector.extract_strided_slice %34 {offsets = [0, 10], sizes = [8, 5], strides = [1, 1]} : vector<8x20xf32> to vector<8x5xf32>
    %38 = vector.extract_strided_slice %34 {offsets = [0, 15], sizes = [8, 5], strides = [1, 1]} : vector<8x20xf32> to vector<8x5xf32>
    %39 = arith.mulf %36, %24 : vector<8x5xf32>
    %40 = arith.mulf %35, %37 : vector<8x5xf32>
    %41 = arith.addf %39, %40 : vector<8x5xf32>
    %42 = math.tanh %41 : vector<8x5xf32>
    %43 = arith.mulf %38, %42 : vector<8x5xf32>
    %44 = vector.extract_strided_slice %20 {offsets = [8, 0], sizes = [8, 20], strides = [1, 1]} : vector<80x20xf32> to vector<8x20xf32>
    %cst_18 = arith.constant dense<0.000000e+00> : vector<8x20xf32>
    %45 = tpu.matmul %43, %6, %cst_18 {dimension_numbers = #tpu.dot_dimension_numbers<[1], [0], [0], [1], [0, 0, 1, 1], [], []>} : vector<8x5xf32>, vector<5x20xf32>, vector<8x20xf32> -> vector<8x20xf32>
    %46 = arith.addf %44, %45 : vector<8x20xf32>
    %47 = vector.broadcast %16 : vector<1x20xf32> to vector<8x20xf32>
    %48 = arith.mulf %46, %47 : vector<8x20xf32>
    %49 = math.tanh %48 : vector<8x20xf32>
    %50 = vector.broadcast %16 : vector<1x20xf32> to vector<8x20xf32>
    %51 = arith.mulf %49, %50 : vector<8x20xf32>
    %52 = vector.broadcast %19 : vector<1x20xf32> to vector<8x20xf32>
    %53 = arith.addf %51, %52 : vector<8x20xf32>
    %54 = vector.extract_strided_slice %53 {offsets = [0, 0], sizes = [8, 5], strides = [1, 1]} : vector<8x20xf32> to vector<8x5xf32>
    %55 = vector.extract_strided_slice %53 {offsets = [0, 5], sizes = [8, 5], strides = [1, 1]} : vector<8x20xf32> to vector<8x5xf32>
    %56 = vector.extract_strided_slice %53 {offsets = [0, 10], sizes = [8, 5], strides = [1, 1]} : vector<8x20xf32> to vector<8x5xf32>
    %57 = vector.extract_strided_slice %53 {offsets = [0, 15], sizes = [8, 5], strides = [1, 1]} : vector<8x20xf32> to vector<8x5xf32>
    %58 = arith.mulf %55, %41 : vector<8x5xf32>
    %59 = arith.mulf %54, %56 : vector<8x5xf32>
    %60 = arith.addf %58, %59 : vector<8x5xf32>
    %61 = math.tanh %60 : vector<8x5xf32>
    %62 = arith.mulf %57, %61 : vector<8x5xf32>
    %63 = vector.extract_strided_slice %20 {offsets = [16, 0], sizes = [8, 20], strides = [1, 1]} : vector<80x20xf32> to vector<8x20xf32>
    %cst_19 = arith.constant dense<0.000000e+00> : vector<8x20xf32>
    %64 = tpu.matmul %62, %6, %cst_19 {dimension_numbers = #tpu.dot_dimension_numbers<[1], [0], [0], [1], [0, 0, 1, 1], [], []>} : vector<8x5xf32>, vector<5x20xf32>, vector<8x20xf32> -> vector<8x20xf32>
    %65 = arith.addf %63, %64 : vector<8x20xf32>
    %66 = vector.broadcast %16 : vector<1x20xf32> to vector<8x20xf32>
    %67 = arith.mulf %65, %66 : vector<8x20xf32>
    %68 = math.tanh %67 : vector<8x20xf32>
    %69 = vector.broadcast %16 : vector<1x20xf32> to vector<8x20xf32>
    %70 = arith.mulf %68, %69 : vector<8x20xf32>
    %71 = vector.broadcast %19 : vector<1x20xf32> to vector<8x20xf32>
    %72 = arith.addf %70, %71 : vector<8x20xf32>
    %73 = vector.extract_strided_slice %72 {offsets = [0, 0], sizes = [8, 5], strides = [1, 1]} : vector<8x20xf32> to vector<8x5xf32>
    %74 = vector.extract_strided_slice %72 {offsets = [0, 5], sizes = [8, 5], strides = [1, 1]} : vector<8x20xf32> to vector<8x5xf32>
    %75 = vector.extract_strided_slice %72 {offsets = [0, 10], sizes = [8, 5], strides = [1, 1]} : vector<8x20xf32> to vector<8x5xf32>
    %76 = vector.extract_strided_slice %72 {offsets = [0, 15], sizes = [8, 5], strides = [1, 1]} : vector<8x20xf32> to vector<8x5xf32>
    %77 = arith.mulf %74, %60 : vector<8x5xf32>
    %78 = arith.mulf %73, %75 : vector<8x5xf32>
    %79 = arith.addf %77, %78 : vector<8x5xf32>
    %80 = math.tanh %79 : vector<8x5xf32>
    %81 = arith.mulf %76, %80 : vector<8x5xf32>
    %82 = vector.extract_strided_slice %20 {offsets = [24, 0], sizes = [8, 20], strides = [1, 1]} : vector<80x20xf32> to vector<8x20xf32>
    %cst_20 = arith.constant dense<0.000000e+00> : vector<8x20xf32>
    %83 = tpu.matmul %81, %6, %cst_20 {dimension_numbers = #tpu.dot_dimension_numbers<[1], [0], [0], [1], [0, 0, 1, 1], [], []>} : vector<8x5xf32>, vector<5x20xf32>, vector<8x20xf32> -> vector<8x20xf32>
    %84 = arith.addf %82, %83 : vector<8x20xf32>
    %85 = vector.broadcast %16 : vector<1x20xf32> to vector<8x20xf32>
    %86 = arith.mulf %84, %85 : vector<8x20xf32>
    %87 = math.tanh %86 : vector<8x20xf32>
    %88 = vector.broadcast %16 : vector<1x20xf32> to vector<8x20xf32>
    %89 = arith.mulf %87, %88 : vector<8x20xf32>
    %90 = vector.broadcast %19 : vector<1x20xf32> to vector<8x20xf32>
    %91 = arith.addf %89, %90 : vector<8x20xf32>
    %92 = vector.extract_strided_slice %91 {offsets = [0, 0], sizes = [8, 5], strides = [1, 1]} : vector<8x20xf32> to vector<8x5xf32>
    %93 = vector.extract_strided_slice %91 {offsets = [0, 5], sizes = [8, 5], strides = [1, 1]} : vector<8x20xf32> to vector<8x5xf32>
    %94 = vector.extract_strided_slice %91 {offsets = [0, 10], sizes = [8, 5], strides = [1, 1]} : vector<8x20xf32> to vector<8x5xf32>
    %95 = vector.extract_strided_slice %91 {offsets = [0, 15], sizes = [8, 5], strides = [1, 1]} : vector<8x20xf32> to vector<8x5xf32>
    %96 = arith.mulf %93, %79 : vector<8x5xf32>
    %97 = arith.mulf %92, %94 : vector<8x5xf32>
    %98 = arith.addf %96, %97 : vector<8x5xf32>
    %99 = math.tanh %98 : vector<8x5xf32>
    %100 = arith.mulf %95, %99 : vector<8x5xf32>
    %101 = vector.extract_strided_slice %20 {offsets = [32, 0], sizes = [8, 20], strides = [1, 1]} : vector<80x20xf32> to vector<8x20xf32>
    %cst_21 = arith.constant dense<0.000000e+00> : vector<8x20xf32>
    %102 = tpu.matmul %100, %6, %cst_21 {dimension_numbers = #tpu.dot_dimension_numbers<[1], [0], [0], [1], [0, 0, 1, 1], [], []>} : vector<8x5xf32>, vector<5x20xf32>, vector<8x20xf32> -> vector<8x20xf32>
    %103 = arith.addf %101, %102 : vector<8x20xf32>
    %104 = vector.broadcast %16 : vector<1x20xf32> to vector<8x20xf32>
    %105 = arith.mulf %103, %104 : vector<8x20xf32>
    %106 = math.tanh %105 : vector<8x20xf32>
    %107 = vector.broadcast %16 : vector<1x20xf32> to vector<8x20xf32>
    %108 = arith.mulf %106, %107 : vector<8x20xf32>
    %109 = vector.broadcast %19 : vector<1x20xf32> to vector<8x20xf32>
    %110 = arith.addf %108, %109 : vector<8x20xf32>
    %111 = vector.extract_strided_slice %110 {offsets = [0, 0], sizes = [8, 5], strides = [1, 1]} : vector<8x20xf32> to vector<8x5xf32>
    %112 = vector.extract_strided_slice %110 {offsets = [0, 5], sizes = [8, 5], strides = [1, 1]} : vector<8x20xf32> to vector<8x5xf32>
    %113 = vector.extract_strided_slice %110 {offsets = [0, 10], sizes = [8, 5], strides = [1, 1]} : vector<8x20xf32> to vector<8x5xf32>
    %114 = vector.extract_strided_slice %110 {offsets = [0, 15], sizes = [8, 5], strides = [1, 1]} : vector<8x20xf32> to vector<8x5xf32>
    %115 = arith.mulf %112, %98 : vector<8x5xf32>
    %116 = arith.mulf %111, %113 : vector<8x5xf32>
    %117 = arith.addf %115, %116 : vector<8x5xf32>
    %118 = math.tanh %117 : vector<8x5xf32>
    %119 = arith.mulf %114, %118 : vector<8x5xf32>
    %120 = vector.extract_strided_slice %20 {offsets = [40, 0], sizes = [8, 20], strides = [1, 1]} : vector<80x20xf32> to vector<8x20xf32>
    %cst_22 = arith.constant dense<0.000000e+00> : vector<8x20xf32>
    %121 = tpu.matmul %119, %6, %cst_22 {dimension_numbers = #tpu.dot_dimension_numbers<[1], [0], [0], [1], [0, 0, 1, 1], [], []>} : vector<8x5xf32>, vector<5x20xf32>, vector<8x20xf32> -> vector<8x20xf32>
    %122 = arith.addf %120, %121 : vector<8x20xf32>
    %123 = vector.broadcast %16 : vector<1x20xf32> to vector<8x20xf32>
    %124 = arith.mulf %122, %123 : vector<8x20xf32>
    %125 = math.tanh %124 : vector<8x20xf32>
    %126 = vector.broadcast %16 : vector<1x20xf32> to vector<8x20xf32>
    %127 = arith.mulf %125, %126 : vector<8x20xf32>
    %128 = vector.broadcast %19 : vector<1x20xf32> to vector<8x20xf32>
    %129 = arith.addf %127, %128 : vector<8x20xf32>
    %130 = vector.extract_strided_slice %129 {offsets = [0, 0], sizes = [8, 5], strides = [1, 1]} : vector<8x20xf32> to vector<8x5xf32>
    %131 = vector.extract_strided_slice %129 {offsets = [0, 5], sizes = [8, 5], strides = [1, 1]} : vector<8x20xf32> to vector<8x5xf32>
    %132 = vector.extract_strided_slice %129 {offsets = [0, 10], sizes = [8, 5], strides = [1, 1]} : vector<8x20xf32> to vector<8x5xf32>
    %133 = vector.extract_strided_slice %129 {offsets = [0, 15], sizes = [8, 5], strides = [1, 1]} : vector<8x20xf32> to vector<8x5xf32>
    %134 = arith.mulf %131, %117 : vector<8x5xf32>
    %135 = arith.mulf %130, %132 : vector<8x5xf32>
    %136 = arith.addf %134, %135 : vector<8x5xf32>
    %137 = math.tanh %136 : vector<8x5xf32>
    %138 = arith.mulf %133, %137 : vector<8x5xf32>
    %139 = vector.extract_strided_slice %20 {offsets = [48, 0], sizes = [8, 20], strides = [1, 1]} : vector<80x20xf32> to vector<8x20xf32>
    %cst_23 = arith.constant dense<0.000000e+00> : vector<8x20xf32>
    %140 = tpu.matmul %138, %6, %cst_23 {dimension_numbers = #tpu.dot_dimension_numbers<[1], [0], [0], [1], [0, 0, 1, 1], [], []>} : vector<8x5xf32>, vector<5x20xf32>, vector<8x20xf32> -> vector<8x20xf32>
    %141 = arith.addf %139, %140 : vector<8x20xf32>
    %142 = vector.broadcast %16 : vector<1x20xf32> to vector<8x20xf32>
    %143 = arith.mulf %141, %142 : vector<8x20xf32>
    %144 = math.tanh %143 : vector<8x20xf32>
    %145 = vector.broadcast %16 : vector<1x20xf32> to vector<8x20xf32>
    %146 = arith.mulf %144, %145 : vector<8x20xf32>
    %147 = vector.broadcast %19 : vector<1x20xf32> to vector<8x20xf32>
    %148 = arith.addf %146, %147 : vector<8x20xf32>
    %149 = vector.extract_strided_slice %148 {offsets = [0, 0], sizes = [8, 5], strides = [1, 1]} : vector<8x20xf32> to vector<8x5xf32>
    %150 = vector.extract_strided_slice %148 {offsets = [0, 5], sizes = [8, 5], strides = [1, 1]} : vector<8x20xf32> to vector<8x5xf32>
    %151 = vector.extract_strided_slice %148 {offsets = [0, 10], sizes = [8, 5], strides = [1, 1]} : vector<8x20xf32> to vector<8x5xf32>
    %152 = vector.extract_strided_slice %148 {offsets = [0, 15], sizes = [8, 5], strides = [1, 1]} : vector<8x20xf32> to vector<8x5xf32>
    %153 = arith.mulf %150, %136 : vector<8x5xf32>
    %154 = arith.mulf %149, %151 : vector<8x5xf32>
    %155 = arith.addf %153, %154 : vector<8x5xf32>
    %156 = math.tanh %155 : vector<8x5xf32>
    %157 = arith.mulf %152, %156 : vector<8x5xf32>
    %158 = vector.extract_strided_slice %20 {offsets = [56, 0], sizes = [8, 20], strides = [1, 1]} : vector<80x20xf32> to vector<8x20xf32>
    %cst_24 = arith.constant dense<0.000000e+00> : vector<8x20xf32>
    %159 = tpu.matmul %157, %6, %cst_24 {dimension_numbers = #tpu.dot_dimension_numbers<[1], [0], [0], [1], [0, 0, 1, 1], [], []>} : vector<8x5xf32>, vector<5x20xf32>, vector<8x20xf32> -> vector<8x20xf32>
    %160 = arith.addf %158, %159 : vector<8x20xf32>
    %161 = vector.broadcast %16 : vector<1x20xf32> to vector<8x20xf32>
    %162 = arith.mulf %160, %161 : vector<8x20xf32>
    %163 = math.tanh %162 : vector<8x20xf32>
    %164 = vector.broadcast %16 : vector<1x20xf32> to vector<8x20xf32>
    %165 = arith.mulf %163, %164 : vector<8x20xf32>
    %166 = vector.broadcast %19 : vector<1x20xf32> to vector<8x20xf32>
    %167 = arith.addf %165, %166 : vector<8x20xf32>
    %168 = vector.extract_strided_slice %167 {offsets = [0, 0], sizes = [8, 5], strides = [1, 1]} : vector<8x20xf32> to vector<8x5xf32>
    %169 = vector.extract_strided_slice %167 {offsets = [0, 5], sizes = [8, 5], strides = [1, 1]} : vector<8x20xf32> to vector<8x5xf32>
    %170 = vector.extract_strided_slice %167 {offsets = [0, 10], sizes = [8, 5], strides = [1, 1]} : vector<8x20xf32> to vector<8x5xf32>
    %171 = vector.extract_strided_slice %167 {offsets = [0, 15], sizes = [8, 5], strides = [1, 1]} : vector<8x20xf32> to vector<8x5xf32>
    %172 = arith.mulf %169, %155 : vector<8x5xf32>
    %173 = arith.mulf %168, %170 : vector<8x5xf32>
    %174 = arith.addf %172, %173 : vector<8x5xf32>
    %175 = math.tanh %174 : vector<8x5xf32>
    %176 = arith.mulf %171, %175 : vector<8x5xf32>
    %177 = vector.extract_strided_slice %20 {offsets = [64, 0], sizes = [8, 20], strides = [1, 1]} : vector<80x20xf32> to vector<8x20xf32>
    %cst_25 = arith.constant dense<0.000000e+00> : vector<8x20xf32>
    %178 = tpu.matmul %176, %6, %cst_25 {dimension_numbers = #tpu.dot_dimension_numbers<[1], [0], [0], [1], [0, 0, 1, 1], [], []>} : vector<8x5xf32>, vector<5x20xf32>, vector<8x20xf32> -> vector<8x20xf32>
    %179 = arith.addf %177, %178 : vector<8x20xf32>
    %180 = vector.broadcast %16 : vector<1x20xf32> to vector<8x20xf32>
    %181 = arith.mulf %179, %180 : vector<8x20xf32>
    %182 = math.tanh %181 : vector<8x20xf32>
    %183 = vector.broadcast %16 : vector<1x20xf32> to vector<8x20xf32>
    %184 = arith.mulf %182, %183 : vector<8x20xf32>
    %185 = vector.broadcast %19 : vector<1x20xf32> to vector<8x20xf32>
    %186 = arith.addf %184, %185 : vector<8x20xf32>
    %187 = vector.extract_strided_slice %186 {offsets = [0, 0], sizes = [8, 5], strides = [1, 1]} : vector<8x20xf32> to vector<8x5xf32>
    %188 = vector.extract_strided_slice %186 {offsets = [0, 5], sizes = [8, 5], strides = [1, 1]} : vector<8x20xf32> to vector<8x5xf32>
    %189 = vector.extract_strided_slice %186 {offsets = [0, 10], sizes = [8, 5], strides = [1, 1]} : vector<8x20xf32> to vector<8x5xf32>
    %190 = vector.extract_strided_slice %186 {offsets = [0, 15], sizes = [8, 5], strides = [1, 1]} : vector<8x20xf32> to vector<8x5xf32>
    %191 = arith.mulf %188, %174 : vector<8x5xf32>
    %192 = arith.mulf %187, %189 : vector<8x5xf32>
    %193 = arith.addf %191, %192 : vector<8x5xf32>
    %194 = math.tanh %193 : vector<8x5xf32>
    %195 = arith.mulf %190, %194 : vector<8x5xf32>
    %196 = vector.extract_strided_slice %20 {offsets = [72, 0], sizes = [8, 20], strides = [1, 1]} : vector<80x20xf32> to vector<8x20xf32>
    %cst_26 = arith.constant dense<0.000000e+00> : vector<8x20xf32>
    %197 = tpu.matmul %195, %6, %cst_26 {dimension_numbers = #tpu.dot_dimension_numbers<[1], [0], [0], [1], [0, 0, 1, 1], [], []>} : vector<8x5xf32>, vector<5x20xf32>, vector<8x20xf32> -> vector<8x20xf32>
    %198 = arith.addf %196, %197 : vector<8x20xf32>
    %199 = vector.broadcast %16 : vector<1x20xf32> to vector<8x20xf32>
    %200 = arith.mulf %198, %199 : vector<8x20xf32>
    %201 = math.tanh %200 : vector<8x20xf32>
    %202 = vector.broadcast %16 : vector<1x20xf32> to vector<8x20xf32>
    %203 = arith.mulf %201, %202 : vector<8x20xf32>
    %204 = vector.broadcast %19 : vector<1x20xf32> to vector<8x20xf32>
    %205 = arith.addf %203, %204 : vector<8x20xf32>
    %206 = vector.extract_strided_slice %205 {offsets = [0, 0], sizes = [8, 5], strides = [1, 1]} : vector<8x20xf32> to vector<8x5xf32>
    %207 = vector.extract_strided_slice %205 {offsets = [0, 5], sizes = [8, 5], strides = [1, 1]} : vector<8x20xf32> to vector<8x5xf32>
    %208 = vector.extract_strided_slice %205 {offsets = [0, 10], sizes = [8, 5], strides = [1, 1]} : vector<8x20xf32> to vector<8x5xf32>
    %209 = vector.extract_strided_slice %205 {offsets = [0, 15], sizes = [8, 5], strides = [1, 1]} : vector<8x20xf32> to vector<8x5xf32>
    %210 = arith.mulf %207, %193 : vector<8x5xf32>
    %211 = arith.mulf %206, %208 : vector<8x5xf32>
    %212 = arith.addf %210, %211 : vector<8x5xf32>
    %213 = math.tanh %212 : vector<8x5xf32>
    %214 = arith.mulf %209, %213 : vector<8x5xf32>
    %215 = vector.extract_strided_slice %5 {offsets = [72, 20], sizes = [8, 20], strides = [1, 1]} : vector<80x40xf32> to vector<8x20xf32>
    %c1 = arith.constant 1 : index
    %c0_27 = arith.constant 0 : index
    %c0_28 = arith.constant 0 : index
    %216 = vector.load %arg4[%c1, %c0_27, %c0_28] : memref<4x8x5xf32, #tpu.memory_space<vmem>>, vector<1x8x5xf32>
    %217 = vector.shape_cast %216 : vector<1x8x5xf32> to vector<8x5xf32>
    %c3 = arith.constant 3 : index
    %c0_29 = arith.constant 0 : index
    %c0_30 = arith.constant 0 : index
    %218 = vector.load %arg4[%c3, %c0_29, %c0_30] : memref<4x8x5xf32, #tpu.memory_space<vmem>>, vector<1x8x5xf32>
    %219 = vector.shape_cast %218 : vector<1x8x5xf32> to vector<8x5xf32>
    %cst_31 = arith.constant dense<0.000000e+00> : vector<8x20xf32>
    %220 = tpu.matmul %217, %7, %cst_31 {dimension_numbers = #tpu.dot_dimension_numbers<[1], [0], [0], [1], [0, 0, 1, 1], [], []>} : vector<8x5xf32>, vector<5x20xf32>, vector<8x20xf32> -> vector<8x20xf32>
    %221 = arith.addf %215, %220 : vector<8x20xf32>
    %222 = vector.broadcast %16 : vector<1x20xf32> to vector<8x20xf32>
    %223 = arith.mulf %221, %222 : vector<8x20xf32>
    %224 = math.tanh %223 : vector<8x20xf32>
    %225 = vector.broadcast %16 : vector<1x20xf32> to vector<8x20xf32>
    %226 = arith.mulf %224, %225 : vector<8x20xf32>
    %227 = vector.broadcast %19 : vector<1x20xf32> to vector<8x20xf32>
    %228 = arith.addf %226, %227 : vector<8x20xf32>
    %229 = vector.extract_strided_slice %228 {offsets = [0, 0], sizes = [8, 5], strides = [1, 1]} : vector<8x20xf32> to vector<8x5xf32>
    %230 = vector.extract_strided_slice %228 {offsets = [0, 5], sizes = [8, 5], strides = [1, 1]} : vector<8x20xf32> to vector<8x5xf32>
    %231 = vector.extract_strided_slice %228 {offsets = [0, 10], sizes = [8, 5], strides = [1, 1]} : vector<8x20xf32> to vector<8x5xf32>
    %232 = vector.extract_strided_slice %228 {offsets = [0, 15], sizes = [8, 5], strides = [1, 1]} : vector<8x20xf32> to vector<8x5xf32>
    %233 = arith.mulf %230, %219 : vector<8x5xf32>
    %234 = arith.mulf %229, %231 : vector<8x5xf32>
    %235 = arith.addf %233, %234 : vector<8x5xf32>
    %236 = math.tanh %235 : vector<8x5xf32>
    %237 = arith.mulf %232, %236 : vector<8x5xf32>
    %cst_32 = arith.constant 1.000000e+00 : f32
    %238 = vector.broadcast %cst_32 : f32 to vector<8x1xf32>
    %239 = tpu.concatenate %214, %237, %238 in 1 : vector<8x5xf32>, vector<8x5xf32>, vector<8x1xf32> -> vector<8x11xf32>
    %c0_33 = arith.constant 0 : index
    %c0_34 = arith.constant 0 : index
    %240 = vector.load %arg5[%c0_33, %c0_34] : memref<11x19xf32, #tpu.memory_space<vmem>>, vector<11x19xf32>
    %cst_35 = arith.constant dense<0.000000e+00> : vector<8x19xf32>
    %241 = tpu.matmul %239, %240, %cst_35 {dimension_numbers = #tpu.dot_dimension_numbers<[1], [0], [0], [1], [0, 0, 1, 1], [], []>} : vector<8x11xf32>, vector<11x19xf32>, vector<8x19xf32> -> vector<8x19xf32>
    %c0_36 = arith.constant 0 : index
    %c0_37 = arith.constant 0 : index
    %242 = vector.load %arg6[%c0_36, %c0_37] : memref<8x19xf32, #tpu.memory_space<vmem>>, vector<8x19xf32>
    tpu.vector_store %arg6[%c0_36, %c0_37], %241 {strides = array<i32>} : memref<8x19xf32, #tpu.memory_space<vmem>>, vector<8x19xf32>,
    return
  }
}

</mosaic_0001>

<bundles_post_ra>
// kernel: tpu_custom_call.1
= control target key start
LH: loop header
LB: loop body
LE: loop exit
PB: predicated region body
PF: predicated region fallthrough
CT: control target
= control target key end

     0   :  { %vm44_vm0 = vcmask 154624   ;;  %vm209_vm1 = vcmask 1044480   ;;  %vm75_vm2 = vcmask 1042432   ;;  %v1656_v6 = vmov 0.0   ;;  %s1960_s0 = inlined_call_operand.vmem [shape: f32[80,19], index: 0, kind: input, shape index: {}]   ;;  %s1961_s1 = inlined_call_operand.vmem [shape: f32[19,40], index: 1, kind: input, shape index: {}]   ;;  %s1962_s2 = inlined_call_operand.vmem [shape: f32[5,40], index: 2, kind: input, shape index: {}]   ;;  %s1963_s3 = inlined_call_operand.vmem [shape: f32[1,40], index: 3, kind: input, shape index: {}]   ;;  %s1964_s4 = inlined_call_operand.vmem [shape: f32[4,8,5], index: 4, kind: input, shape index: {}]   ;;  %s1965_s5 = inlined_call_operand.vmem [shape: f32[11,19], index: 5, kind: input, shape index: {}]   ;;  %s1966_s6 = inlined_call_operand.hbm [shape: f32[8,19], index: 6, kind: output, shape index: {}]  }
   0x1   :  { %v34_v0 = vld [vmem:[%s1961_s1] sm:$0xff]  ;;  %v35_v1 = vld [vmem:[%s1961_s1 + $0x8] sm:$0xff]  ;;  %v36_v2 = vld [vmem:[%s1961_s1 + $0x10] sm:$0x7]  ;;  %1504 = vmatprep.subr.mxu1 %v1656_v6  ;;  %vm205_vm3 = vcmask 39936  }
   0x2   :  { %v1566_v3 = vpack.c.bf16 %v35_v1, %v34_v0  ;;  %v24_v4 = vld [vmem:[%s1960_s0] sm:$0xff] }
   0x3   :  { %v1720_v5 = vld [vmem:[%s1962_s2] sm:$0x1f]  ;;  %1489 = vmatprep.mubr.msk.f32.mxu0 %vm44_vm0, %v24_v4 }
   0x4   :  { %v202_v7 = vld [vmem:[%s1964_s4] sm:$0xff] }
   0x5   :  { %11 = vsyncpa [#allocation3], 0  ;;  %1567 = vmatprep.subr.bf16.mxu0 %v1566_v3  ;;  %1505 = vmatpush3.msk.msra.mxu1 %vm209_vm1, %v1720_v5  ;;  %vm1657_vm4 = vmmov 0   ;;  %v25_v8 = vld [vmem:[%s1960_s0 + $0x8] sm:$0xff]  ;;  %v195_v9 = vlaneseq  ;;  %v1751_v13 = vld [vmem:[%s1963_s3] ss:$0 sm:$0xff] }
   0x6   :  { %1569 = vmatpush3.bf16.msra.mxu0 %v1566_v3  ;;  %1506 = vmatprep.mubr.msk.f32.mxu1 %vm1657_vm4, %v1656_v6  ;;  %v1658_v17 = vmov 0.5   ;;  %s1659_s3 = smov 118   ;;  %v1418_v25 = vld [vmem:[%s1964_s4 + $0x10] sm:$0xff]  ;;  %s1660_s13 = smov 5   ;;  %v27_v50 = vld [vmem:[%s1960_s0 + $0x18] sm:$0xff]  ;;  %vm1667_vm8 = vmmov 1  }
   0x7   :  { %1487 = vmatprep.subr.msk.mxu0 %vm75_vm2, %v36_v2  ;;  %1507 = vmatmul.mubr.msk.f32.vlgmr.msra.gmra.mrb[0].mxu1 %vm205_vm3, %v202_v7  ;;  %v196_v10 = vand.u32 127, %v195_v9  ;;  %s1661_s14 = smov 10   ;;  %s1662_s15 = smov 113   ;;  %v26_v49 = vld [vmem:[%s1960_s0 + $0x10] sm:$0xff]  ;;  %vm1572_vm9 = vmpackc.low %vm75_vm2, %vm1667_vm8  ;;  %vm1310_vm10 = vcmask 80896   ;;  %vm1314_vm11 = vcmask 89088  }
   0x8   :  { %1509 = vmatprep.subr.mxu1 %v1656_v6  ;;  %1511 = vmatprep.mubr.msk.f32.mxu1 %vm1657_vm4, %v1656_v6  ;;  %s1664_s8 = smov 20   ;;  %s1665_s11 = smov 25  }
   0x9   :  { %1510 = vmatpush3.msk.msra.mxu1 %vm209_vm1, %v1720_v5  ;;  %vm197_vm5 = vcmp.ge.s32.totalorder %v196_v10, 10  ;;  %vm198_vm6 = vcmp.lt.s32.totalorder %v196_v10, 15 }
   0xa   :  { %1488 = vmatpush3.msk.msra.mxu0 %vm75_vm2, %v36_v2  ;;  %1514 = vmatprep.subr.mxu1 %v1656_v6  ;;  %vm199_vm7 = vmand %vm197_vm5, %vm198_vm6 }
   0xb   :  { %1490 = vmatmul.mubr.msk.f32.vlgmr.msra.gmra.mrb[0].mxu0 %vm44_vm0, %v25_v8  ;;  %1534 = vmatprep.subr.mxu0 %v1656_v6  ;;  %v1754_v18 = vsel %vm199_vm7, 1.0, %v1658_v17  ;;  %v1757_v22 = vsel %vm199_vm7, 0.0, %v1658_v17 }
   0xc   :  { %1535 = vmatpush3.msk.msra.mxu0 %vm209_vm1, %v1720_v5  ;;  %1492 = vmatprep.mubr.msk.f32.mxu0 %vm44_vm0, %v26_v49 }
   0xd   :  { %1544 = vmatprep.subr.mxu0 %v1656_v6 }
   0xf   :  { %1493 = vmatmul.mubr.msk.f32.gmra.mrb[2].mxu0 %vm44_vm0, %v27_v50 }
  0xda   :  { %v279_v11 = vpop.f32.mrb[0].mxu1 }
  0xdb   :  { %v1508_v12 = vpop.f32.mrb[1].mxu1 }
  0xde   :  { %v1491_v14 = vpop.f32.mrb[0].mxu0 }
  0xdf   :  { %v145_v15 = vpop.f32.mrb[1].mxu0  ;;  %v151_v36 = vadd.f32 %v1491_v14, %v1751_v13 }
  0xe0   :  { %v146_v16 = vadd.f32 %v1751_v13, %v145_v15 }
  0xe2   :  { %v283_v19 = vadd.f32 %v279_v11, %v146_v16  ;;  %v1494_v54 = vpop.f32.mrb[2].mxu0 }
  0xe3   :  { %v155_v55 = vpop.f32.mrb[3].mxu0  ;;  %v161_v12 = vadd.f32 %v1494_v54, %v1751_v13 }
  0xe4   :  { %v284_v20 = vmul.f32 %v283_v19, %v1754_v18  ;;  %v156_v57 = vadd.f32 %v1751_v13, %v155_v55 }
  0xe6   :  { %1588 = vtanh.f32 %v284_v20 }
  0xf0   :  { %v1589_v21 = vpop.eup %1588 }
  0xf1   :  { %v286_v23 = vmul.f32 %v1589_v21, %v1754_v18 }
  0xf3   :  { %v287_v24 = vadd.f32 %v286_v23, %v1757_v22 }
  0xf5   :  { %294 = vrot.lane.b32.xlu0 %v287_v24, %s1659_s3 }
  0xf9   :  { %289 = vrot.lane.b32.xlu0 %v1418_v25, %s1660_s13 }
 0x167   :  { %v295_v26 = vpop.permute.xlu0 %294 }
 0x168   :  { %v297_v27 = vmul.f32 %v295_v26, %v287_v24 }
 0x16a   :  { %299 = vrot.lane.b32.xlu1 %v297_v27, %s1660_s13 }
 0x16b   :  { %v290_v28 = vpop.permute.xlu0 %289 }
 0x16c   :  { %v292_v29 = vmul.f32 %v290_v28, %v287_v24  ;;  %v28_v28 = vld [vmem:[%s1960_s0 + $0x20] sm:$0xff] }
 0x16d   :  { %1495 = vmatprep.mubr.msk.f32.mxu0 %vm44_vm0, %v28_v28 }
 0x1dc   :  { %v300_v30 = vpop.permute.xlu1 %299 }
 0x1dd   :  { %v302_v31 = vadd.f32 %v300_v30, %v292_v29  ;;  %v29_v29 = vld [vmem:[%s1960_s0 + $0x28] sm:$0xff] }
 0x1de   :  { %1496 = vmatmul.mubr.msk.f32.gmra.mrb[4].mxu0 %vm44_vm0, %v29_v29 }
 0x1df   :  { %1590 = vtanh.f32 %v302_v31 }
 0x1e9   :  { %v1591_v32 = vpop.eup %1590 }
 0x1ea   :  { %305 = vrot.lane.b32.xlu1 %v1591_v32, %s1661_s14 }
 0x25c   :  { %v306_v33 = vpop.permute.xlu1 %305 }
 0x25d   :  { %v308_v34 = vmul.f32 %v306_v33, %v287_v24 }
 0x25f   :  { %310 = vrot.lane.b32.xlu0 %v308_v34, %s1662_s15 }
 0x2b1   :  { %v1497_v33 = vpop.f32.mrb[4].mxu0 }
 0x2b2   :  { %v165_v34 = vpop.f32.mrb[5].mxu0 }
 0x2d1   :  { %v311_v35 = vpop.permute.xlu0 %310 }
 0x2d2   :  { %1512 = vmatmul.mubr.msk.f32.vlgmr.msra.gmra.mrb[2].mxu1 %vm205_vm3, %v311_v35 }
 0x2d3   :  { %1515 = vmatpush3.msk.msra.mxu1 %vm209_vm1, %v1720_v5  ;;  %1516 = vmatprep.mubr.msk.f32.mxu1 %vm1657_vm4, %v1656_v6 }
 0x2d4   :  { %1519 = vmatprep.subr.mxu1 %v1656_v6 }
 0x3a5   :  { %v380_v37 = vpop.f32.mrb[2].mxu1 }
 0x3a6   :  { %v384_v38 = vadd.f32 %v380_v37, %v151_v36  ;;  %v1513_v39 = vpop.f32.mrb[3].mxu1  ;;  %v166_v36 = vadd.f32 %v1751_v13, %v165_v34 }
 0x3a8   :  { %v385_v40 = vmul.f32 %v384_v38, %v1754_v18 }
 0x3aa   :  { %1592 = vtanh.f32 %v385_v40 }
 0x3b4   :  { %v1593_v41 = vpop.eup %1592 }
 0x3b5   :  { %v387_v42 = vmul.f32 %v1593_v41, %v1754_v18 }
 0x3b7   :  { %v388_v43 = vadd.f32 %v387_v42, %v1757_v22 }
 0x3b9   :  { %391 = vrot.lane.b32.xlu1 %v388_v43, %s1659_s3  ;;  %v389_v46 = vmul.f32 %v388_v43, %v302_v31 }
 0x42b   :  { %v392_v44 = vpop.permute.xlu1 %391 }
 0x42c   :  { %v394_v45 = vmul.f32 %v392_v44, %v388_v43 }
 0x42e   :  { %396 = vrot.lane.b32.xlu0 %v394_v45, %s1660_s13 }
 0x4a0   :  { %v397_v47 = vpop.permute.xlu0 %396 }
 0x4a1   :  { %v399_v48 = vadd.f32 %v397_v47, %v389_v46 }
 0x4a3   :  { %1594 = vtanh.f32 %v399_v48 }
 0x4ad   :  { %v1595_v51 = vpop.eup %1594 }
 0x4ae   :  { %402 = vrot.lane.b32.xlu1 %v1595_v51, %s1661_s14 }
 0x520   :  { %v403_v52 = vpop.permute.xlu1 %402 }
 0x521   :  { %v405_v53 = vmul.f32 %v403_v52, %v388_v43 }
 0x523   :  { %407 = vrot.lane.b32.xlu0 %v405_v53, %s1662_s15  ;;  %v171_v53 = vadd.f32 %v1497_v33, %v1751_v13 }
 0x595   :  { %v408_v56 = vpop.permute.xlu0 %407 }
 0x596   :  { %1517 = vmatmul.mubr.msk.f32.vlgmr.msra.gmra.mrb[4].mxu1 %vm205_vm3, %v408_v56 }
 0x597   :  { %1520 = vmatpush3.msk.msra.mxu1 %vm209_vm1, %v1720_v5  ;;  %1521 = vmatprep.mubr.msk.f32.mxu1 %vm1657_vm4, %v1656_v6 }
 0x598   :  { %1524 = vmatprep.subr.mxu1 %v1656_v6 }
 0x669   :  { %v477_v58 = vpop.f32.mrb[4].mxu1 }
 0x66a   :  { %v481_v59 = vadd.f32 %v477_v58, %v156_v57  ;;  %v1518_v60 = vpop.f32.mrb[5].mxu1 }
 0x66c   :  { %v482_v61 = vmul.f32 %v481_v59, %v1754_v18 }
 0x66e   :  { %1596 = vtanh.f32 %v482_v61 }
 0x678   :  { %v1597_v62 = vpop.eup %1596 }
 0x679   :  { %v484_v63 = vmul.f32 %v1597_v62, %v1754_v18 }
 0x67b   :  { %v485_v0 = vadd.f32 %v484_v63, %v1757_v22 }
 0x67d   :  { %488 = vrot.lane.b32.xlu1 %v485_v0, %s1659_s3  ;;  %v486_v3 = vmul.f32 %v485_v0, %v399_v48 }
 0x6ef   :  { %v489_v1 = vpop.permute.xlu1 %488 }
 0x6f0   :  { %v491_v2 = vmul.f32 %v489_v1, %v485_v0 }
 0x6f2   :  { %493 = vrot.lane.b32.xlu0 %v491_v2, %s1660_s13  ;;  %v30_v2 = vld [vmem:[%s1960_s0 + $0x30] sm:$0xff] }
 0x6f3   :  { %1498 = vmatprep.mubr.msk.f32.mxu0 %vm44_vm0, %v30_v2  ;;  %v1439_v2 = vld [vmem:[%s1964_s4 + $0x8] sm:$0xff] }
 0x764   :  { %v494_v4 = vpop.permute.xlu0 %493 }
 0x765   :  { %v496_v7 = vadd.f32 %v494_v4, %v486_v3  ;;  %v31_v3 = vld [vmem:[%s1960_s0 + $0x38] sm:$0xff]  ;;  %v32_v4 = vld [vmem:[%s1960_s0 + $0x40] sm:$0xff] }
 0x766   :  { %1499 = vmatmul.mubr.msk.f32.gmra.mrb[6].mxu0 %vm44_vm0, %v31_v3 }
 0x767   :  { %1598 = vtanh.f32 %v496_v7  ;;  %1501 = vmatprep.mubr.msk.f32.mxu0 %vm44_vm0, %v32_v4 }
 0x771   :  { %v1599_v8 = vpop.eup %1598 }
 0x772   :  { %499 = vrot.lane.b32.xlu1 %v1599_v8, %s1661_s14 }
 0x7e4   :  { %v500_v9 = vpop.permute.xlu1 %499 }
 0x7e5   :  { %v502_v10 = vmul.f32 %v500_v9, %v485_v0 }
 0x7e7   :  { %504 = vrot.lane.b32.xlu0 %v502_v10, %s1662_s15 }
 0x859   :  { %v505_v11 = vpop.permute.xlu0 %504 }
 0x85a   :  { %1522 = vmatmul.mubr.msk.f32.vlgmr.msra.gmra.mrb[6].mxu1 %vm205_vm3, %v505_v11  ;;  %v1500_v11 = vpop.f32.mrb[6].mxu0 }
 0x85b   :  { %1525 = vmatpush3.msk.msra.mxu1 %vm209_vm1, %v1720_v5  ;;  %1526 = vmatprep.mubr.msk.f32.mxu1 %vm1657_vm4, %v1656_v6 }
 0x85c   :  { %1529 = vmatprep.subr.mxu1 %v1656_v6 }
 0x92d   :  { %v574_v14 = vpop.f32.mrb[6].mxu1 }
 0x92e   :  { %v578_v15 = vadd.f32 %v574_v14, %v161_v12  ;;  %v1523_v16 = vpop.f32.mrb[7].mxu1  ;;  %v175_v12 = vpop.f32.mrb[7].mxu0 }
 0x930   :  { %v579_v17 = vmul.f32 %v578_v15, %v1754_v18 }
 0x932   :  { %1600 = vtanh.f32 %v579_v17  ;;  %v176_v17 = vadd.f32 %v1751_v13, %v175_v12 }
 0x93c   :  { %v1601_v19 = vpop.eup %1600 }
 0x93d   :  { %v581_v20 = vmul.f32 %v1601_v19, %v1754_v18 }
 0x93f   :  { %v582_v21 = vadd.f32 %v581_v20, %v1757_v22 }
 0x941   :  { %585 = vrot.lane.b32.xlu1 %v582_v21, %s1659_s3  ;;  %v583_v25 = vmul.f32 %v582_v21, %v496_v7  ;;  %v33_v7 = vld [vmem:[%s1960_s0 + $0x48] sm:$0xff]  ;;  %s1663_s0 = smov 108  }
 0x942   :  { %1502 = vmatmul.mubr.msk.f32.gmra.mrb[8].mxu0 %vm44_vm0, %v33_v7 }
 0x943   :  { %1536 = vmatprep.mubr.msk.f32.mxu0 %vm1657_vm4, %v1656_v6 }
 0x9b3   :  { %v586_v23 = vpop.permute.xlu1 %585 }
 0x9b4   :  { %v588_v24 = vmul.f32 %v586_v23, %v582_v21 }
 0x9b6   :  { %590 = vrot.lane.b32.xlu0 %v588_v24, %s1660_s13 }
 0xa15   :  { %v1873_v14 = vpop.f32.mrb[8].mxu0 }
 0xa16   :  { %v185_v15 = vpop.f32.mrb[9].mxu0 }
 0xa28   :  { %v591_v26 = vpop.permute.xlu0 %590 }
 0xa29   :  { %v593_v27 = vadd.f32 %v591_v26, %v583_v25 }
 0xa2b   :  { %1602 = vtanh.f32 %v593_v27 }
 0xa35   :  { %v1603_v30 = vpop.eup %1602 }
 0xa36   :  { %596 = vrot.lane.b32.xlu1 %v1603_v30, %s1661_s14 }
 0xaa8   :  { %v597_v31 = vpop.permute.xlu1 %596 }
 0xaa9   :  { %v599_v32 = vmul.f32 %v597_v31, %v582_v21 }
 0xaab   :  { %601 = vrot.lane.b32.xlu0 %v599_v32, %s1662_s15 }
 0xb1d   :  { %v602_v35 = vpop.permute.xlu0 %601 }
 0xb1e   :  { %1527 = vmatmul.mubr.msk.f32.vlgmr.msra.gmra.mrb[8].mxu1 %vm205_vm3, %v602_v35 }
 0xb1f   :  { %1530 = vmatpush3.msk.msra.mxu1 %vm209_vm1, %v1720_v5  ;;  %1531 = vmatprep.mubr.msk.f32.mxu1 %vm1657_vm4, %v1656_v6 }
 0xb20   :  { %1539 = vmatprep.subr.mxu1 %v1656_v6 }
 0xbf1   :  { %v671_v37 = vpop.f32.mrb[8].mxu1 }
 0xbf2   :  { %v675_v38 = vadd.f32 %v671_v37, %v166_v36  ;;  %v1528_v39 = vpop.f32.mrb[9].mxu1  ;;  %v181_v36 = vadd.f32 %v1500_v11, %v1751_v13  ;;  %v191_v11 = vadd.f32 %v1873_v14, %v1751_v13 }
 0xbf4   :  { %v676_v40 = vmul.f32 %v675_v38, %v1754_v18 }
 0xbf6   :  { %1604 = vtanh.f32 %v676_v40 }
 0xc00   :  { %v1605_v41 = vpop.eup %1604 }
 0xc01   :  { %v678_v42 = vmul.f32 %v1605_v41, %v1754_v18 }
 0xc03   :  { %v679_v43 = vadd.f32 %v678_v42, %v1757_v22 }
 0xc05   :  { %682 = vrot.lane.b32.xlu1 %v679_v43, %s1659_s3  ;;  %v680_v46 = vmul.f32 %v679_v43, %v593_v27 }
 0xc77   :  { %v683_v44 = vpop.permute.xlu1 %682 }
 0xc78   :  { %v685_v45 = vmul.f32 %v683_v44, %v679_v43 }
 0xc7a   :  { %687 = vrot.lane.b32.xlu0 %v685_v45, %s1660_s13 }
 0xcec   :  { %v688_v47 = vpop.permute.xlu0 %687 }
 0xced   :  { %v690_v48 = vadd.f32 %v688_v47, %v680_v46 }
 0xcef   :  { %1606 = vtanh.f32 %v690_v48 }
 0xcf9   :  { %v1607_v49 = vpop.eup %1606 }
 0xcfa   :  { %693 = vrot.lane.b32.xlu1 %v1607_v49, %s1661_s14 }
 0xd6c   :  { %v694_v50 = vpop.permute.xlu1 %693 }
 0xd6d   :  { %v696_v51 = vmul.f32 %v694_v50, %v679_v43 }
 0xd6f   :  { %698 = vrot.lane.b32.xlu0 %v696_v51, %s1662_s15 }
 0xde1   :  { %v699_v52 = vpop.permute.xlu0 %698 }
 0xde2   :  { %1532 = vmatmul.mubr.msk.f32.vlgmr.msra.gmra.mrb[10].mxu1 %vm205_vm3, %v699_v52 }
 0xde3   :  { %1540 = vmatpush3.msk.msra.mxu1 %vm209_vm1, %v1720_v5  ;;  %1541 = vmatprep.mubr.msk.f32.mxu1 %vm1657_vm4, %v1656_v6 }
 0xde4   :  { %1549 = vmatprep.subr.mxu1 %v1656_v6 }
 0xeb5   :  { %v768_v54 = vpop.f32.mrb[10].mxu1 }
 0xeb6   :  { %v772_v55 = vadd.f32 %v768_v54, %v171_v53  ;;  %v1533_v56 = vpop.f32.mrb[11].mxu1  ;;  %v186_v53 = vadd.f32 %v1751_v13, %v185_v15 }
 0xeb8   :  { %v773_v57 = vmul.f32 %v772_v55, %v1754_v18 }
 0xeba   :  { %1608 = vtanh.f32 %v773_v57 }
 0xec4   :  { %v1609_v58 = vpop.eup %1608 }
 0xec5   :  { %v775_v59 = vmul.f32 %v1609_v58, %v1754_v18 }
 0xec7   :  { %v776_v60 = vadd.f32 %v775_v59, %v1757_v22 }
 0xec9   :  { %779 = vrot.lane.b32.xlu1 %v776_v60, %s1659_s3  ;;  %v777_v63 = vmul.f32 %v776_v60, %v690_v48 }
 0xf3b   :  { %v780_v61 = vpop.permute.xlu1 %779 }
 0xf3c   :  { %v782_v62 = vmul.f32 %v780_v61, %v776_v60 }
 0xf3e   :  { %784 = vrot.lane.b32.xlu0 %v782_v62, %s1660_s13 }
 0xfb0   :  { %v785_v0 = vpop.permute.xlu0 %784 }
 0xfb1   :  { %v787_v1 = vadd.f32 %v785_v0, %v777_v63 }
 0xfb3   :  { %1610 = vtanh.f32 %v787_v1 }
 0xfbd   :  { %v1611_v8 = vpop.eup %1610 }
 0xfbe   :  { %790 = vrot.lane.b32.xlu1 %v1611_v8, %s1661_s14 }
0x1030   :  { %v791_v9 = vpop.permute.xlu1 %790 }
0x1031   :  { %v793_v10 = vmul.f32 %v791_v9, %v776_v60 }
0x1033   :  { %795 = vrot.lane.b32.xlu0 %v793_v10, %s1662_s15 }
0x10a5   :  { %v796_v16 = vpop.permute.xlu0 %795 }
0x10a6   :  { %1537 = vmatmul.mubr.msk.f32.vlgmr.msra.gmra.mrb[10].mxu0 %vm205_vm3, %v796_v16 }
0x10a7   :  { %1545 = vmatpush3.msk.msra.mxu0 %vm209_vm1, %v1720_v5  ;;  %1546 = vmatprep.mubr.msk.f32.mxu0 %vm1657_vm4, %v1656_v6 }
0x10a8   :  { %1554 = vmatprep.subr.mxu0 %v1656_v6 }
0x1179   :  { %v865_v19 = vpop.f32.mrb[10].mxu0 }
0x117a   :  { %v869_v20 = vadd.f32 %v865_v19, %v176_v17  ;;  %v1538_v21 = vpop.f32.mrb[11].mxu0 }
0x117c   :  { %v870_v23 = vmul.f32 %v869_v20, %v1754_v18 }
0x117e   :  { %1612 = vtanh.f32 %v870_v23 }
0x1188   :  { %v1613_v24 = vpop.eup %1612 }
0x1189   :  { %v872_v25 = vmul.f32 %v1613_v24, %v1754_v18 }
0x118b   :  { %v873_v26 = vadd.f32 %v872_v25, %v1757_v22 }
0x118d   :  { %876 = vrot.lane.b32.xlu1 %v873_v26, %s1659_s3  ;;  %v874_v29 = vmul.f32 %v873_v26, %v787_v1 }
0x11ff   :  { %v877_v27 = vpop.permute.xlu1 %876 }
0x1200   :  { %v879_v28 = vmul.f32 %v877_v27, %v873_v26 }
0x1202   :  { %881 = vrot.lane.b32.xlu0 %v879_v28, %s1660_s13  ;;  %v1440_v28 = vld [vmem:[%s1964_s4 + $0x18] sm:$0xff] }
0x1274   :  { %v882_v30 = vpop.permute.xlu0 %881 }
0x1275   :  { %v884_v31 = vadd.f32 %v882_v30, %v874_v29 }
0x1277   :  { %1614 = vtanh.f32 %v884_v31 }
0x1281   :  { %v1615_v32 = vpop.eup %1614 }
0x1282   :  { %887 = vrot.lane.b32.xlu1 %v1615_v32, %s1661_s14 }
0x12f4   :  { %v888_v33 = vpop.permute.xlu1 %887 }
0x12f5   :  { %v890_v34 = vmul.f32 %v888_v33, %v873_v26 }
0x12f7   :  { %892 = vrot.lane.b32.xlu0 %v890_v34, %s1662_s15 }
0x1369   :  { %v893_v35 = vpop.permute.xlu0 %892 }
0x136a   :  { %1542 = vmatmul.mubr.msk.f32.vlgmr.msra.gmra.mrb[12].mxu1 %vm205_vm3, %v893_v35 }
0x136b   :  { %1550 = vmatpush3.msk.msra.mxu1 %vm209_vm1, %v1720_v5  ;;  %1551 = vmatprep.mubr.msk.f32.mxu1 %vm1657_vm4, %v1656_v6 }
0x143d   :  { %v962_v37 = vpop.f32.mrb[12].mxu1 }
0x143e   :  { %v966_v38 = vadd.f32 %v962_v37, %v181_v36  ;;  %v1543_v39 = vpop.f32.mrb[13].mxu1 }
0x143f   :  { %v1312_v39 = vld [vmem:[%s1965_s5] sm:$0xff] }
0x1440   :  { %v967_v40 = vmul.f32 %v966_v38, %v1754_v18 }
0x1442   :  { %1616 = vtanh.f32 %v967_v40  ;;  %v1313_v40 = vld [vmem:[%s1965_s5 + $0x8] sm:$0x7]  ;;  %s1669_s5 = smov [#allocation2]  }
0x1443   :  { %s1398_s17 = sshll.u32 %s1669_s5, 4  ;;  %s1399_s17 = int_to_ptr.vmem [resolvable:$true] %s1398_s17 }
0x1444   :  { %p1637_p1 = scmp.lt.s32.totalorder %s1399_s17, %s1399_s17 }
0x144c   :  { %v1617_v41 = vpop.eup %1616 }
0x144d   :  { %v969_v42 = vmul.f32 %v1617_v41, %v1754_v18  ;;  %v1666_v41 = vmov 0.0|0.0  }
0x144e   :  { %1570 = vmatprep.subr.bf16.mxu1 %v1666_v41 }
0x144f   :  { %v970_v43 = vadd.f32 %v969_v42, %v1757_v22  ;;  %v1571_v42 = vpack.c.bf16 %v1313_v40, %v1312_v39 }
0x1451   :  { %973 = vrot.lane.b32.xlu1 %v970_v43, %s1659_s3  ;;  %v971_v46 = vmul.f32 %v970_v43, %v884_v31 }
0x14c3   :  { %v974_v44 = vpop.permute.xlu1 %973 }
0x14c4   :  { %v976_v45 = vmul.f32 %v974_v44, %v970_v43 }
0x14c6   :  { %978 = vrot.lane.b32.xlu0 %v976_v45, %s1660_s13 }
0x1538   :  { %v979_v47 = vpop.permute.xlu0 %978 }
0x1539   :  { %v981_v48 = vadd.f32 %v979_v47, %v971_v46 }
0x153b   :  { %1618 = vtanh.f32 %v981_v48 }
0x1545   :  { %v1619_v49 = vpop.eup %1618 }
0x1546   :  { %984 = vrot.lane.b32.xlu1 %v1619_v49, %s1661_s14 }
0x15b8   :  { %v985_v50 = vpop.permute.xlu1 %984 }
0x15b9   :  { %v987_v51 = vmul.f32 %v985_v50, %v970_v43 }
0x15bb   :  { %989 = vrot.lane.b32.xlu0 %v987_v51, %s1662_s15 }
0x162d   :  { %v990_v52 = vpop.permute.xlu0 %989 }
0x162e   :  { %1547 = vmatmul.mubr.msk.f32.vlgmr.msra.gmra.mrb[12].mxu0 %vm205_vm3, %v990_v52 }
0x162f   :  { %1556 = vmatprep.mubr.msk.f32.mxu0 %vm1657_vm4, %v1656_v6 }
0x1701   :  { %v1059_v54 = vpop.f32.mrb[12].mxu0 }
0x1702   :  { %v1063_v55 = vadd.f32 %v1059_v54, %v186_v53  ;;  %v1548_v56 = vpop.f32.mrb[13].mxu0 }
0x1704   :  { %v1064_v57 = vmul.f32 %v1063_v55, %v1754_v18 }
0x1706   :  { %1620 = vtanh.f32 %v1064_v57 }
0x1710   :  { %v1621_v58 = vpop.eup %1620 }
0x1711   :  { %v1066_v59 = vmul.f32 %v1621_v58, %v1754_v18 }
0x1713   :  { %v1067_v60 = vadd.f32 %v1066_v59, %v1757_v22 }
0x1715   :  { %1070 = vrot.lane.b32.xlu1 %v1067_v60, %s1659_s3  ;;  %v1068_v63 = vmul.f32 %v1067_v60, %v981_v48 }
0x1787   :  { %v1071_v61 = vpop.permute.xlu1 %1070 }
0x1788   :  { %v1073_v62 = vmul.f32 %v1071_v61, %v1067_v60 }
0x178a   :  { %1075 = vrot.lane.b32.xlu0 %v1073_v62, %s1660_s13 }
0x178e   :  { %1186 = vrot.lane.b32.xlu0 %v1720_v5, %s1663_s0 }
0x17fc   :  { %v1076_v0 = vpop.permute.xlu0 %1075 }
0x17fd   :  { %v1078_v1 = vadd.f32 %v1076_v0, %v1068_v63 }
0x17ff   :  { %1622 = vtanh.f32 %v1078_v1 }
0x1800   :  { %v1187_v3 = vpop.permute.xlu0 %1186 }
0x1801   :  { %1555 = vmatpush3.msk.msra.mxu0 %vm209_vm1, %v1187_v3 }
0x1802   :  { %1557 = vmatmul.mubr.msk.f32.vlgmr.msra.gmra.mrb[14].mxu0 %vm205_vm3, %v1439_v2 }
0x1809   :  { %v1623_v4 = vpop.eup %1622 }
0x180a   :  { %1081 = vrot.lane.b32.xlu1 %v1623_v4, %s1661_s14 }
0x187c   :  { %v1082_v7 = vpop.permute.xlu1 %1081 }
0x187d   :  { %v1084_v8 = vmul.f32 %v1082_v7, %v1067_v60 }
0x187f   :  { %1086 = vrot.lane.b32.xlu1 %v1084_v8, %s1662_s15 }
0x1883   :  { %1269 = vrot.lane.b32.xlu1 %v1754_v18, %s1664_s8 }
0x18d5   :  { %v1259_v5 = vpop.f32.mrb[14].mxu0 }
0x18d6   :  { %1264 = vrot.lane.b32.xlu0 %v1259_v5, %s1664_s8  ;;  %v1558_v9 = vpop.f32.mrb[15].mxu0 }
0x18da   :  { %1276 = vrot.lane.b32.xlu0 %v1757_v22, %s1664_s8 }
0x18f1   :  { %v1087_v10 = vpop.permute.xlu1 %1086 }
0x18f2   :  { %1552 = vmatmul.mubr.msk.f32.vlgmr.msra.gmra.mrb[14].mxu1 %vm205_vm3, %v1087_v10 }
0x18f3   :  { %1563 = vmatprep.mubr.msk.f32.mxu1 %vm1657_vm4, %v1656_v6  ;;  %1573 = vmatpush3.bf16.msk.msra.mxu1 %vm1572_vm9, %v1571_v42 }
0x18f5   :  { %v1270_v15 = vpop.permute.xlu1 %1269 }
0x1948   :  { %v1265_v12 = vpop.permute.xlu0 %1264 }
0x1949   :  { %v1267_v16 = vadd.f32 %v1265_v12, %v191_v11 }
0x194b   :  { %v1272_v17 = vmul.f32 %v1270_v15, %v1267_v16 }
0x194c   :  { %v1277_v20 = vpop.permute.xlu0 %1276 }
0x194d   :  { %1624 = vtanh.f32 %v1272_v17 }
0x1957   :  { %v1625_v19 = vpop.eup %1624 }
0x1958   :  { %v1274_v21 = vmul.f32 %v1625_v19, %v1270_v15 }
0x195a   :  { %v1279_v23 = vadd.f32 %v1277_v20, %v1274_v21 }
0x195c   :  { %1286 = vrot.lane.b32.xlu0 %v1279_v23, %s1659_s3 }
0x19c5   :  { %v1156_v24 = vpop.f32.mrb[14].mxu1 }
0x19c6   :  { %v1160_v25 = vadd.f32 %v1156_v24, %v191_v11  ;;  %v1553_v26 = vpop.f32.mrb[15].mxu1 }
0x19c8   :  { %v1161_v27 = vmul.f32 %v1160_v25, %v1754_v18 }
0x19ca   :  { %1626 = vtanh.f32 %v1161_v27 }
0x19ce   :  { %v1287_v29 = vpop.permute.xlu0 %1286 }
0x19cf   :  { %v1289_v30 = vmul.f32 %v1287_v29, %v1279_v23 }
0x19d4   :  { %v1627_v6 = vpop.eup %1626 }
0x19d5   :  { %v1163_v13 = vmul.f32 %v1627_v6, %v1754_v18 }
0x19d7   :  { %v1164_v14 = vadd.f32 %v1163_v13, %v1757_v22 }
0x19d9   :  { %1167 = vrot.lane.b32.xlu1 %v1164_v14, %s1659_s3  ;;  %v1165_v36 = vmul.f32 %v1164_v14, %v1078_v1 }
0x19dd   :  { %1281 = vrot.lane.b32.xlu1 %v1440_v28, %s1665_s11 }
0x19e1   :  { %1291 = vrot.lane.b32.xlu1 %v1289_v30, %s1660_s13 }
0x1a4b   :  { %v1168_v31 = vpop.permute.xlu1 %1167 }
0x1a4c   :  { %v1170_v32 = vmul.f32 %v1168_v31, %v1164_v14 }
0x1a4e   :  { %1172 = vrot.lane.b32.xlu0 %v1170_v32, %s1660_s13  ;;  %s1668_s13 = smov 98  }
0x1a4f   :  { %v1282_v33 = vpop.permute.xlu1 %1281 }
0x1a50   :  { %v1284_v18 = vmul.f32 %v1282_v33, %v1279_v23 }
0x1a53   :  { %v1292_v34 = vpop.permute.xlu1 %1291 }
0x1a54   :  { %v1294_v22 = vadd.f32 %v1292_v34, %v1284_v18 }
0x1a56   :  { %1628 = vtanh.f32 %v1294_v22 }
0x1a60   :  { %v1629_v35 = vpop.eup %1628 }
0x1a61   :  { %1297 = vrot.lane.b32.xlu1 %v1629_v35, %s1661_s14 }
0x1ac0   :  { %v1173_v37 = vpop.permute.xlu0 %1172 }
0x1ac1   :  { %v1175_v38 = vadd.f32 %v1173_v37, %v1165_v36 }
0x1ac3   :  { %1630 = vtanh.f32 %v1175_v38 }
0x1acd   :  { %v1631_v43 = vpop.eup %1630 }
0x1ace   :  { %1178 = vrot.lane.b32.xlu0 %v1631_v43, %s1661_s14  ;;  %s1632_s14 = scalar_lea.vmem %s1399_s17, 128 }
0x1acf   :  { %p1633_p0 = scmp.ne.s32.totalorder %s1399_s17, %s1632_s14  ;;  %p1638_p2 = scmp.lt.s32.totalorder %s1632_s14, %s1632_s14 }
0x1ad1   :  { %p1639_p3 = por %p1638_p2, %p1637_p1 }
0x1ad3   :  { %v1298_v44 = vpop.permute.xlu1 %1297  ;;  %p1640_p4 = pnand %p1639_p3, %p1633_p0 }
0x1ad4   :  { %v1300_v45 = vmul.f32 %v1298_v44, %v1279_v23 }
0x1ad6   :  { %1306 = vrot.lane.b32.xlu1 %v1300_v45, %s1668_s13 }
0x1b40   :  { %v1179_v46 = vpop.permute.xlu0 %1178 }
0x1b41   :  { %v1181_v47 = vmul.f32 %v1179_v46, %v1164_v14 }
0x1b43   :  { %1302 = vrot.lane.b32.xlu0 %v1181_v47, %s1662_s15 }
0x1b48   :  { %v1307_v48 = vpop.permute.xlu1 %1306 }
0x1bb5   :  { %v1303_v49 = vpop.permute.xlu0 %1302 }
0x1bb6   :  { %v1309_v50 = vsel %vm205_vm3, %v1303_v49, %v1307_v48 }
0x1bb7   :  { %v1311_v51 = vsel %vm1310_vm10, %v1309_v50, 1.0 }
0x1bb8   :  { %1564 = vmatmul.mubr.msk.f32.vlgmr.msra.gmra.mrb[16].mxu1 %vm1314_vm11, %v1311_v51 }
0x1c8b   :  { %v1387_v52 = vpop.f32.mrb[16].mxu1 }
0x1c8c   :  { %1391 = vst.msk [vmem:[#allocation2] sm:$0xff] %vm44_vm0, %v1387_v52  ;;  %v1565_v53 = vpop.f32.mrb[17].mxu1 }
0x1c8d   :  { %1643 = shalt.err (!%p1640_p4)
}
0x1c8e   :  { %s1644_s19 = scalar_lea.hbm %s1966_s6, 128 }
0x1c8f   :  { %p1645_p5 = scmp.ne.s32.totalorder %s1966_s6, %s1644_s19  ;;  %p1648_p6 = scmp.lt.u32.totalorder %s1644_s19, %s1966_s6 }
0x1c91   :  { %p1650_p7 = pnand %p1648_p6, %p1645_p5 }
0x1c93   :  { %1653 = shalt.err (!%p1650_p7)
}
0x1c94   :  { %1401 = dma.vmem_to_hbm [thread:$0]  %s1399_s17, 128, %s1966_s6, [#allocation3]  }
0x1c95   :  { %1654 = dma.done.wait [#allocation3], 128  }
0x1c96   :  { %1655 = vsyncadd [#allocation3], 4294967168 }
0x1c97   :  { %1405 = vsyncpa [#allocation3], 1 }

</bundles_post_ra>
